<compile_context>
chip_gen: v7x
topology: tpu7x:2x2x1
jax: 0.10.0
libtpu: 0.0.40
codegen_flags: <defaults>
</compile_context>

<pallas_src>
import math

import jax
import jax.numpy as jnp
import numpy as np
from jax.experimental import pallas as pl
from jax.experimental.pallas import tpu as pltpu


def _round_up(v, m):
    return (v + m - 1) // m * m


def _gcn_kernel_adj_first(adj_ref, x_ref, w_ref, b_ref, o_ref):
    """out[b] = (adj_tile @ x[b]) @ W + bias.  Used when F_in <= F_out.

    adj_ref: (TM, Np)    x_ref: (B, Np, F_in)
    w_ref:   (F_in, Fp)  b_ref: (1, Fp)       o_ref: (B, TM, Fp)
    """
    B = x_ref.shape[0]
    TM = adj_ref.shape[0]
    a = adj_ref[...]
    # Adjacency contraction on the *narrow* feature dim, per batch (2-D MXU
    # matmuls), rows concatenated so the wide weight matmul sees M = B*TM.
    ax = jnp.concatenate(
        [jnp.dot(a, x_ref[bi], preferred_element_type=jnp.float32)
         for bi in range(B)],
        axis=0)                                                   # (B*TM, F_in)
    out = jnp.dot(ax.astype(w_ref.dtype), w_ref[...],
                  preferred_element_type=jnp.float32)             # (B*TM, Fp)
    out = out + b_ref[...]                                        # f32 bias add
    for bi in range(B):
        o_ref[bi] = out[bi * TM:(bi + 1) * TM, :].astype(o_ref.dtype)


def _gcn_kernel_weight_first(adj_ref, x_ref, w_ref, b_ref, o_ref):
    """out[b] = adj_tile @ (x[b] @ W) + bias.  Used when F_out < F_in."""
    B, Np, _ = x_ref.shape
    a = adj_ref[...]
    bias = b_ref[...]
    # Batch collapsed into M for the weight matmul.
    x_flat = jnp.concatenate([x_ref[bi] for bi in range(B)], axis=0)  # (B*Np, F_in)
    support = jnp.dot(x_flat, w_ref[...],
                      preferred_element_type=jnp.float32)             # (B*Np, Fp)
    support = support.astype(a.dtype)
    for bi in range(B):
        out = jnp.dot(a, support[bi * Np:(bi + 1) * Np, :],
                      preferred_element_type=jnp.float32)             # (TM, Fp)
        o_ref[bi] = (out + bias).astype(o_ref.dtype)


def graph_convolution(x, adj, weight, bias=None, *, compute_dtype=None,
                      row_tile=512):
    """GCN forward: out[b] = adj @ x[b] @ weight (+ bias).

    x: (B, N, F_in), adj: (N, N), weight: (F_in, F_out), bias: (F_out,) | None.
    Returns (B, N, F_out) in x's original dtype (accumulation always f32).
    """
    B, N, F_in = x.shape
    assert adj.shape == (N, N)
    assert weight.shape[0] == F_in
    F_out = weight.shape[1]
    out_dtype = x.dtype

    if compute_dtype is not None:
        x = x.astype(compute_dtype)
        adj = adj.astype(compute_dtype)
        weight = weight.astype(compute_dtype)

    # Pad node dim to the f32 sublane tile (8): in-kernel row concat/slices stay
    # vreg-aligned and zero padding keeps the contraction exact.
    N_pad = _round_up(N, 8)
    # Pad output features to a full 128-lane multiple -> unmasked, dense stores.
    F_pad = _round_up(max(F_out, 128), 128)

    adj_p = jnp.pad(adj, ((0, N_pad - N), (0, N_pad - N)))
    x_p = jnp.pad(x, ((0, 0), (0, N_pad - N), (0, 0)))
    w_p = jnp.pad(weight, ((0, 0), (0, F_pad - F_out)))
    if bias is None:
        b_p = jnp.zeros((1, F_pad), jnp.float32)
    else:
        b_p = jnp.pad(bias.astype(jnp.float32).reshape(1, F_out),
                      ((0, 0), (0, F_pad - F_out)))

    # Row-tile the node dimension: parallel work for multi-TC chips and bounded
    # adjacency VMEM as N grows (single tile at small N).
    tm = N_pad if N_pad <= row_tile else row_tile
    grid = (pl.cdiv(N_pad, tm),)

    kernel = (_gcn_kernel_adj_first if F_in <= F_out
              else _gcn_kernel_weight_first)

    itemsize = jnp.dtype(x_p.dtype).itemsize
    cost = pl.CostEstimate(
        flops=2 * B * (N * N * min(F_in, F_out) + N * F_in * F_out),
        transcendentals=0,
        bytes_accessed=(adj_p.size + x_p.size + w_p.size) * itemsize
        + b_p.size * 4
        + B * N_pad * F_pad * jnp.dtype(out_dtype).itemsize,
    )

    out = pl.pallas_call(
        kernel,
        out_shape=jax.ShapeDtypeStruct((B, N_pad, F_pad), out_dtype),
        grid_spec=pltpu.PrefetchScalarGridSpec(
            num_scalar_prefetch=0,
            grid=grid,
            in_specs=[
                pl.BlockSpec((tm, N_pad), lambda i: (i, 0)),          # adj row tile
                pl.BlockSpec((B, N_pad, F_in), lambda i: (0, 0, 0)),  # x (shared)
                pl.BlockSpec((F_in, F_pad), lambda i: (0, 0)),        # weight (shared)
                pl.BlockSpec((1, F_pad), lambda i: (0, 0)),           # bias (shared)
            ],
            out_specs=pl.BlockSpec((B, tm, F_pad), lambda i: (0, i, 0)),
        ),
        compiler_params=pltpu.CompilerParams(
            dimension_semantics=("parallel",),
        ),
        cost_estimate=cost,
        # TODO(synk): pipeline_mode=pl.Buffered(1) on the constant-index operands
        # (x/weight/bias) would halve their VMEM footprint on v7x.
    )(adj_p, x_p, w_p, b_p)

    return out[:, :N, :F_out]


if __name__ == "__main__":
    # Graph from the reference file: 3 nodes, adj = ones - eye.
    g0 = np.array([0, 1, 2]).reshape([-1, 1])
    n_nodes = len(g0)
    adj_np = np.ones((n_nodes, n_nodes), np.float32) - np.eye(n_nodes, dtype=np.float32)

    B, N = 2, n_nodes
    in_features, out_features = 16, 32

    key = jax.random.PRNGKey(0)
    kx, kw = jax.random.split(key)

    # Xavier-normal init with gain=0.02, zero bias (the module's 'xavier' branch).
    gain = 0.02
    std = gain * math.sqrt(2.0 / (in_features + out_features))
    weight = std * jax.random.normal(kw, (in_features, out_features), jnp.float32)
    bias = jnp.zeros((out_features,), jnp.float32)

    x = jax.random.normal(kx, (B, N, in_features), jnp.float32)
    adj = jnp.asarray(adj_np)

    # --- f32 path (F_in < F_out -> adjacency-first ordering) ---
    out = jax.block_until_ready(graph_convolution(x, adj, weight, bias))
    support_ref = jnp.einsum("bnf,fo->bno", x, weight)
    out_ref = jnp.einsum("jk,bkl->bjl", adj, support_ref) + bias
    np.testing.assert_allclose(np.asarray(out), np.asarray(out_ref),
                               rtol=1e-5, atol=1e-6)

    # --- reversed feature sizes (F_out < F_in -> weight-first ordering) ---
    w2 = std * jax.random.normal(kw, (out_features, in_features), jnp.float32)
    b2 = jnp.zeros((in_features,), jnp.float32)
    x2 = jax.random.normal(kx, (B, N, out_features), jnp.float32)
    out2 = jax.block_until_ready(graph_convolution(x2, adj, w2, b2))
    ref2 = jnp.einsum("jk,bkl->bjl", adj, jnp.einsum("bnf,fo->bno", x2, w2)) + b2
    np.testing.assert_allclose(np.asarray(out2), np.asarray(ref2),
                               rtol=1e-5, atol=1e-6)

    # --- bf16 compute path (v6e/v7x MXU peak; f32 accumulation + f32 bias) ---
    out_bf16 = jax.block_until_ready(
        graph_convolution(x, adj, weight, bias, compute_dtype=jnp.bfloat16))
    np.testing.assert_allclose(np.asarray(out_bf16), np.asarray(out_ref),
                               rtol=5e-2, atol=2e-3)

    print("KERNEL_OK")
</pallas_src>

<mosaic_0001>
module attributes {stable_mosaic.version = 11 : i64} {
  func.func @_gcn_kernel_adj_first(%arg0: i32, %arg1: memref<8x8xf32, #tpu.memory_space<vmem>>, %arg2: memref<2x8x16xf32, #tpu.memory_space<vmem>>, %arg3: memref<16x128xf32, #tpu.memory_space<vmem>>, %arg4: memref<1x128xf32, #tpu.memory_space<vmem>>, %arg5: memref<2x8x128xf32, #tpu.memory_space<vmem>>) attributes {dimension_semantics = [#tpu.dimension_semantics<parallel>], iteration_bounds = array<i64: 1>, scalar_prefetch = 0 : i64, scratch_operands = 0 : i64, tpu.core_type = #tpu.core_type<tc>, window_params = [{transform_indices = @transform_0, window_bounds = array<i64: 8, 8>}, {pipeline_mode = #tpu.pipeline_mode<synchronous>, transform_indices = @transform_1, window_bounds = array<i64: 2, 8, 16>}, {pipeline_mode = #tpu.pipeline_mode<synchronous>, transform_indices = @transform_2, window_bounds = array<i64: 16, 128>}, {pipeline_mode = #tpu.pipeline_mode<synchronous>, transform_indices = @transform_3, window_bounds = array<i64: 1, 128>}, {transform_indices = @transform_4, window_bounds = array<i64: 2, 8, 128>}]} {
    %c0 = arith.constant 0 : index
    %c0_0 = arith.constant 0 : index
    %0 = vector.load %arg1[%c0, %c0_0] : memref<8x8xf32, #tpu.memory_space<vmem>>, vector<8x8xf32>
    %c0_1 = arith.constant 0 : index
    %c0_2 = arith.constant 0 : index
    %c0_3 = arith.constant 0 : index
    %1 = vector.load %arg2[%c0_1, %c0_2, %c0_3] : memref<2x8x16xf32, #tpu.memory_space<vmem>>, vector<1x8x16xf32>
    %2 = vector.shape_cast %1 : vector<1x8x16xf32> to vector<8x16xf32>
    %cst = arith.constant dense<0.000000e+00> : vector<8x16xf32>
    %3 = tpu.matmul %0, %2, %cst {dimension_numbers = #tpu.dot_dimension_numbers<[1], [0], [0], [1], [0, 0, 1, 1], [], []>} : vector<8x8xf32>, vector<8x16xf32>, vector<8x16xf32> -> vector<8x16xf32>
    %c1 = arith.constant 1 : index
    %c0_4 = arith.constant 0 : index
    %c0_5 = arith.constant 0 : index
    %4 = vector.load %arg2[%c1, %c0_4, %c0_5] : memref<2x8x16xf32, #tpu.memory_space<vmem>>, vector<1x8x16xf32>
    %5 = vector.shape_cast %4 : vector<1x8x16xf32> to vector<8x16xf32>
    %cst_6 = arith.constant dense<0.000000e+00> : vector<8x16xf32>
    %6 = tpu.matmul %0, %5, %cst_6 {dimension_numbers = #tpu.dot_dimension_numbers<[1], [0], [0], [1], [0, 0, 1, 1], [], []>} : vector<8x8xf32>, vector<8x16xf32>, vector<8x16xf32> -> vector<8x16xf32>
    %7 = tpu.concatenate %3, %6 in 0 : vector<8x16xf32>, vector<8x16xf32> -> vector<16x16xf32>
    %c0_7 = arith.constant 0 : index
    %c0_8 = arith.constant 0 : index
    %8 = vector.load %arg3[%c0_7, %c0_8] : memref<16x128xf32, #tpu.memory_space<vmem>>, vector<16x128xf32>
    %cst_9 = arith.constant dense<0.000000e+00> : vector<16x128xf32>
    %9 = tpu.matmul %7, %8, %cst_9 {dimension_numbers = #tpu.dot_dimension_numbers<[1], [0], [0], [1], [0, 0, 1, 1], [], []>} : vector<16x16xf32>, vector<16x128xf32>, vector<16x128xf32> -> vector<16x128xf32>
    %c0_10 = arith.constant 0 : index
    %c0_11 = arith.constant 0 : index
    %10 = vector.load %arg4[%c0_10, %c0_11] : memref<1x128xf32, #tpu.memory_space<vmem>>, vector<1x128xf32>
    %11 = vector.broadcast %10 : vector<1x128xf32> to vector<16x128xf32>
    %12 = arith.addf %9, %11 : vector<16x128xf32>
    %13 = vector.extract_strided_slice %12 {offsets = [0, 0], sizes = [8, 128], strides = [1, 1]} : vector<16x128xf32> to vector<8x128xf32>
    %c0_12 = arith.constant 0 : index
    %c0_13 = arith.constant 0 : index
    %c0_14 = arith.constant 0 : index
    %14 = vector.load %arg5[%c0_12, %c0_13, %c0_14] : memref<2x8x128xf32, #tpu.memory_space<vmem>>, vector<1x8x128xf32>
    %15 = vector.shape_cast %14 : vector<1x8x128xf32> to vector<8x128xf32>
    %16 = vector.shape_cast %13 : vector<8x128xf32> to vector<1x8x128xf32>
    tpu.vector_store %arg5[%c0_12, %c0_13, %c0_14], %16 {strides = array<i32>} : memref<2x8x128xf32, #tpu.memory_space<vmem>>, vector<1x8x128xf32>,
    %17 = vector.extract_strided_slice %12 {offsets = [8, 0], sizes = [8, 128], strides = [1, 1]} : vector<16x128xf32> to vector<8x128xf32>
    %c1_15 = arith.constant 1 : index
    %c0_16 = arith.constant 0 : index
    %c0_17 = arith.constant 0 : index
    %18 = vector.load %arg5[%c1_15, %c0_16, %c0_17] : memref<2x8x128xf32, #tpu.memory_space<vmem>>, vector<1x8x128xf32>
    %19 = vector.shape_cast %18 : vector<1x8x128xf32> to vector<8x128xf32>
    %20 = vector.shape_cast %17 : vector<8x128xf32> to vector<1x8x128xf32>
    tpu.vector_store %arg5[%c1_15, %c0_16, %c0_17], %20 {strides = array<i32>} : memref<2x8x128xf32, #tpu.memory_space<vmem>>, vector<1x8x128xf32>,
    return
  }
  func.func @transform_0(%arg0: i32) -> (i32, i32) {
    %c0_i32 = arith.constant 0 : i32
    %c0_i32_0 = arith.constant 0 : i32
    return %arg0, %c0_i32 : i32, i32
  }
  func.func @transform_1(%arg0: i32) -> (i32, i32, i32) {
    %c0_i32 = arith.constant 0 : i32
    %c0_i32_0 = arith.constant 0 : i32
    %c0_i32_1 = arith.constant 0 : i32
    %c0_i32_2 = arith.constant 0 : i32
    return %c0_i32, %c0_i32_0, %c0_i32_1 : i32, i32, i32
  }
  func.func @transform_2(%arg0: i32) -> (i32, i32) {
    %c0_i32 = arith.constant 0 : i32
    %c0_i32_0 = arith.constant 0 : i32
    %c0_i32_1 = arith.constant 0 : i32
    return %c0_i32, %c0_i32_0 : i32, i32
  }
  func.func @transform_3(%arg0: i32) -> (i32, i32) {
    %c0_i32 = arith.constant 0 : i32
    %c0_i32_0 = arith.constant 0 : i32
    %c0_i32_1 = arith.constant 0 : i32
    return %c0_i32, %c0_i32_0 : i32, i32
  }
  func.func @transform_4(%arg0: i32) -> (i32, i32, i32) {
    %c0_i32 = arith.constant 0 : i32
    %c0_i32_0 = arith.constant 0 : i32
    %c0_i32_1 = arith.constant 0 : i32
    return %c0_i32, %arg0, %c0_i32_0 : i32, i32, i32
  }
}

</mosaic_0001>

<bundles_post_ra>
// kernel: tpu_custom_call.1
= control target key start
LH: loop header
LB: loop body
LE: loop exit
PB: predicated region body
PF: predicated region fallthrough
CT: control target
= control target key end

     0   :  { %9 = vsyncpa [#allocation3], 0  ;;  %s546_s0 = inlined_call_operand.hbm [shape: f32[8,8], index: 0, kind: input, shape index: {}]   ;;  %s547_s1 = inlined_call_operand.hbm [shape: f32[2,8,16], index: 1, kind: input, shape index: {}]   ;;  %s548_s2 = inlined_call_operand.hbm [shape: f32[16,128], index: 2, kind: input, shape index: {}]   ;;  %s549_s3 = inlined_call_operand.vmem [shape: f32[1,128], index: 3, kind: input, shape index: {}]   ;;  %s550_s4 = inlined_call_operand.hbm [shape: f32[2,8,128], index: 4, kind: output, shape index: {}]  }
   0x1   :  { %10 = vsyncpa [#allocation6], 0 }
   0x2   :  { %11 = vsyncpa [#allocation4], 0  ;;  %s453_s15 = smov [#allocation5]   ;;  %s359_s19 = scalar_lea.hbm %s547_s1, 256 }
   0x3   :  { %s27_s16 = sshll.u32 %s453_s15, 4  ;;  %p360_p0 = scmp.ne.s32.totalorder %s547_s1, %s359_s19  ;;  %s28_s16 = int_to_ptr.vmem [resolvable:$true] %s27_s16 }
   0x4   :  { %p363_p1 = scmp.lt.u32.totalorder %s359_s19, %s547_s1 }
   0x6   :  { %p365_p2 = pnand %p363_p1, %p360_p0 }
   0x8   :  { %368 = shalt.err (!%p365_p2)
}
   0x9   :  { %s369_s24 = scalar_lea.vmem %s28_s16, 256  ;;  %p374_p4 = scmp.lt.s32.totalorder %s28_s16, %s28_s16 }
   0xa   :  { %p370_p3 = scmp.ne.s32.totalorder %s28_s16, %s369_s24  ;;  %p375_p5 = scmp.lt.s32.totalorder %s369_s24, %s369_s24 }
   0xc   :  { %p376_p6 = por %p375_p5, %p374_p4 }
   0xe   :  { %p377_p7 = pnand %p376_p6, %p370_p3 }
  0x10   :  { %380 = shalt.err (!%p377_p7)
}
  0x11   :  { %s454_s25 = smov 128   ;;  %s455_s26 = smov 8  }
  0x12   :  { %33 = dma.hbm_to_vmem [thread:$0]  %s547_s1, 256, %s28_s16, [#allocation6], %s454_s25, %s454_s25, %s455_s26  }
  0x13   :  { %s456_s29 = smov [#allocation2]   ;;  %s457_s5 = smov [#allocation7]  }
  0x14   :  { %s18_s30 = sshll.u32 %s456_s29, 4  ;;  %s39_s6 = sshll.u32 %s457_s5, 4  ;;  %s19_s30 = int_to_ptr.vmem [resolvable:$true] %s18_s30  ;;  %s40_s6 = int_to_ptr.vmem [resolvable:$true] %s39_s6 }
  0x15   :  { %s381_s9 = scalar_lea.hbm %s546_s0, 128 }
  0x16   :  { %p382_p8 = scmp.ne.s32.totalorder %s546_s0, %s381_s9  ;;  %p385_p9 = scmp.lt.u32.totalorder %s381_s9, %s546_s0 }
  0x18   :  { %p387_p10 = pnand %p385_p9, %p382_p8 }
  0x1a   :  { %390 = shalt.err (!%p387_p10)
}
  0x1b   :  { %s391_s1 = scalar_lea.vmem %s19_s30, 128  ;;  %p396_p12 = scmp.lt.s32.totalorder %s19_s30, %s19_s30 }
  0x1c   :  { %p392_p11 = scmp.ne.s32.totalorder %s19_s30, %s391_s1  ;;  %p397_p13 = scmp.lt.s32.totalorder %s391_s1, %s391_s1 }
  0x1e   :  { %p398_p0 = por %p397_p13, %p396_p12 }
  0x20   :  { %p399_p1 = pnand %p398_p0, %p392_p11 }
  0x22   :  { %402 = shalt.err (!%p399_p1)
}
  0x23   :  { %21 = dma.hbm_to_vmem [thread:$0]  %s546_s0, 128, %s19_s30, [#allocation3]  }
  0x24   :  { %s403_s18 = scalar_lea.hbm %s548_s2, 256 }
  0x25   :  { %p404_p2 = scmp.ne.s32.totalorder %s548_s2, %s403_s18  ;;  %p407_p3 = scmp.lt.u32.totalorder %s403_s18, %s548_s2 }
  0x27   :  { %p409_p4 = pnand %p407_p3, %p404_p2 }
  0x29   :  { %412 = shalt.err (!%p409_p4)
}
  0x2a   :  { %s413_s23 = scalar_lea.vmem %s40_s6, 256  ;;  %p418_p6 = scmp.lt.s32.totalorder %s40_s6, %s40_s6 }
  0x2b   :  { %p414_p5 = scmp.ne.s32.totalorder %s40_s6, %s413_s23  ;;  %p419_p7 = scmp.lt.s32.totalorder %s413_s23, %s413_s23 }
  0x2d   :  { %p420_p8 = por %p419_p7, %p418_p6 }
  0x2f   :  { %p421_p9 = pnand %p420_p8, %p414_p5 }
  0x31   :  { %424 = shalt.err (!%p421_p9)
}
  0x32   :  { %45 = dma.hbm_to_vmem [thread:$0]  %s548_s2, 256, %s40_s6, [#allocation6], %s454_s25, %s454_s25, %s455_s26  }
  0x33   :  { %447 = dma.done.wait [#allocation3], 128  }
  0x34   :  { %448 = vsyncadd [#allocation3], 4294967168 }
  0x35   :  { %449 = dma.done.wait [#allocation6], 512  }
  0x36   :  { %450 = vsyncadd [#allocation6], 4294966784  ;;  %v458_v0 = vmov 0.0   ;;  %vm459_vm0 = vmmov 0   ;;  %vm59_vm1 = vcmask 64512   ;;  %v58_v1 = vld [vmem:[#allocation5] sm:$0xff] }
  0x37   :  { %330 = vmatprep.subr.mxu0 %v458_v0  ;;  %335 = vmatprep.subr.mxu1 %v458_v0  ;;  %v134_v2 = vld [vmem:[#allocation5 + $0x8] sm:$0xff]  ;;  %v57_v3 = vld [vmem:[#allocation2] sm:$0xff]  ;;  %v205_v4 = vld [vmem:[#allocation7] sm:$0xff]  ;;  %vm214_vm2 = vcmask 130048   ;;  %s460_s28 = smov [#allocation8]  }
  0x38   :  { %332 = vmatprep.mubr.msk.f32.mxu0 %vm459_vm0, %v458_v0  ;;  %337 = vmatprep.mubr.msk.f32.mxu1 %vm459_vm0, %v458_v0  ;;  %v206_v5 = vld [vmem:[#allocation7 + $0x8] sm:$0xff]  ;;  %s304_s29 = sshll.u32 %s460_s28, 4  ;;  %s305_s29 = int_to_ptr.vmem [resolvable:$true] %s304_s29 }
  0x39   :  { %331 = vmatpush3.msra.mxu0 %v58_v1  ;;  %336 = vmatpush3.msra.mxu1 %v134_v2  ;;  %v347_v6 = vpack.c.bf16 %v206_v5, %v205_v4  ;;  %v319_v11 = vld [vmem:[%s549_s3] ss:$0 sm:$0xff]  ;;  %s425_s30 = scalar_lea.vmem %s305_s29, 256  ;;  %p430_p11 = scmp.lt.s32.totalorder %s305_s29, %s305_s29 }
  0x3a   :  { %333 = vmatmul.mubr.msk.f32.vlgmr.msra.gmra.mrb[0].mxu0 %vm59_vm1, %v57_v3  ;;  %338 = vmatmul.mubr.msk.f32.vlgmr.msra.gmra.mrb[0].mxu1 %vm59_vm1, %v57_v3  ;;  %p426_p10 = scmp.ne.s32.totalorder %s305_s29, %s425_s30  ;;  %p431_p12 = scmp.lt.s32.totalorder %s425_s30, %s425_s30 }
  0x3b   :  { %348 = vmatprep.subr.bf16.mxu0 %v347_v6 }
  0x3c   :  { %350 = vmatpush3.bf16.msra.mxu0 %v347_v6  ;;  %p432_p13 = por %p431_p12, %p430_p11 }
  0x3e   :  { %p433_p0 = pnand %p432_p13, %p426_p10 }
 0x10d   :  { %v129_v7 = vpop.f32.mrb[0].mxu0  ;;  %v201_v8 = vpop.f32.mrb[0].mxu1 }
 0x10e   :  { %v334_v9 = vpop.f32.mrb[1].mxu0  ;;  %v339_v10 = vpop.f32.mrb[1].mxu1  ;;  %344 = vmatprep.mubr.msk.f32.mxu0 %vm214_vm2, %v129_v7 }
 0x10f   :  { %345 = vmatmul.mubr.msk.f32.vlgmr.msra.gmra.mrb[2].mxu0 %vm214_vm2, %v201_v8 }
 0x1e2   :  { %v346_v12 = vpop.f32.mrb[2].mxu0 }
 0x1e3   :  { %v293_v13 = vadd.f32 %v346_v12, %v319_v11  ;;  %v287_v14 = vpop.f32.mrb[3].mxu0 }
 0x1e4   :  { %v288_v15 = vadd.f32 %v319_v11, %v287_v14 }
 0x1e5   :  { %298 = vst [vmem:[#allocation8 + $0x8] sm:$0xff] %v293_v13 }
 0x1e6   :  { %296 = vst [vmem:[#allocation8] sm:$0xff] %v288_v15 }
 0x1e7   :  { %436 = shalt.err (!%p433_p0)
}
 0x1e8   :  { %s437_s3 = scalar_lea.hbm %s550_s4, 256 }
 0x1e9   :  { %p438_p1 = scmp.ne.s32.totalorder %s550_s4, %s437_s3  ;;  %p441_p2 = scmp.lt.u32.totalorder %s437_s3, %s550_s4 }
 0x1eb   :  { %p443_p3 = pnand %p441_p2, %p438_p1 }
 0x1ed   :  { %446 = shalt.err (!%p443_p3)
}
 0x1ee   :  { %310 = dma.vmem_to_hbm [thread:$0]  %s305_s29, 256, %s550_s4, [#allocation4], %s454_s25, %s454_s25, %s455_s26  }
 0x1ef   :  { %451 = dma.done.wait [#allocation4], 256  }
 0x1f0   :  { %452 = vsyncadd [#allocation4], 4294967040 }
 0x1f1   :  { %314 = vsyncpa [#allocation3], 1 }
 0x1f2   :  { %315 = vsyncpa [#allocation6], 1 }
 0x1f3   :  { %316 = vsyncpa [#allocation4], 1 }

</bundles_post_ra>
